<compile_context>
chip_gen: v7x
topology: tpu7x:2x2x1
jax: 0.10.0
libtpu: 0.0.40
codegen_flags: <defaults>
</compile_context>

<pallas_src>
import jax
import jax.numpy as jnp
from jax.experimental import pallas as pl
from jax.experimental.pallas import tpu as pltpu


def _round_up(x, m):
    return (x + m - 1) // m * m


def _vmem_capacity_bytes():
    try:
        info = pltpu.get_tpu_info()
        cap = getattr(info, "vmem_capacity_bytes", None)
        if cap:
            return int(cap)
    except Exception:
        pass
    return 64 * 2**20  # conservative default (v7x per-TensorCore VMEM)


def _pick_tile_m(M, desired):
    """Row-tile choice.  Prefer a tile that divides M exactly (no jnp.pad pass over the
    big patches array) and, when M is large enough, leaves >= 2 row tiles for megacore."""
    if M < 16:
        return M, M  # single full-extent tile, no padding needed
    cap = min(desired, max(8, ((M // 2) // 8) * 8))
    t = cap - cap % 8
    while t >= 8:
        if M % t == 0:
            return t, M
        t -= 8
    # No multiple-of-8 divisor <= cap: fall back to padding the row axis (extra pass).
    t = max(8, cap - cap % 8)
    return t, _round_up(M, t)


def _pick_tile_n(dim_p, desired):
    """dim_p is a multiple of 128; return a multiple of 128 that divides dim_p."""
    if dim_p <= desired:
        return dim_p
    t = max(128, (desired // 128) * 128)
    while t > 128 and dim_p % t != 0:
        t -= 128
    return t


def _vmem_need(tile_m, tile_n, Din, nfreqs, in_itemsize, out_itemsize):
    return (
        2 * tile_m * Din * in_itemsize        # patches blocks (double-buffered)
        + 2 * tile_m * 3 * 4                  # pos blocks
        + 2 * Din * tile_n * 2                # wp (bf16), counted double-buffered
        + 2 * 3 * nfreqs * 4                  # zs (f32)
        + 2 * 2 * nfreqs * tile_n * 4         # we_sin + we_cos (f32)
        + 2 * tile_m * tile_n * out_itemsize  # output blocks
        + tile_m * Din * 2                    # in-kernel bf16 cast of patches
        + 2 * tile_m * tile_n * 4             # x and emb f32 temporaries
        + 3 * tile_m * nfreqs * 4             # theta / sin / cos temporaries
    )


def _patch_decoder_kernel(patches_ref, pos_ref, wp_ref, zs_ref, wes_ref, wec_ref,
                          out_ref):
    # patchify: cast the streamed patches tile to bf16 on the VPU (hidden under the MXU
    # matmul) instead of materializing a converted copy in HBM wrapper-side.
    p = patches_ref[...].astype(jnp.bfloat16)
    x = jnp.dot(p, wp_ref[...], preferred_element_type=jnp.float32)

    # FourierEmbed (in_dim=3): tiny K=3 contraction on the VPU, all f32 (v5e has no bf16
    # VPU/EUP).  zs[k, h] = z[h, k] * freqs[h] / 3 was folded in once, wrapper-side.
    pos = pos_ref[...]                        # (TM, 3) f32
    zs = zs_ref[...]                          # (3, nfreqs) f32
    theta = (pos[:, 0:1] * zs[0:1, :]
             + pos[:, 1:2] * zs[1:2, :]
             + pos[:, 2:3] * zs[2:3, :])      # (TM, nfreqs) f32

    s = jnp.sin(theta)
    c = jnp.cos(theta)

    # emb_proj split into sin/cos halves: two lane-aligned matmuls, no concatenate.
    # Kept in f32 -- tiny relative to patchify, keeps the positional term accurate.
    emb = jnp.dot(s, wes_ref[...], preferred_element_type=jnp.float32)
    emb = emb + jnp.dot(c, wec_ref[...], preferred_element_type=jnp.float32)

    out_ref[...] = (x + emb).astype(out_ref.dtype)


def patch_decoder_forward(patches_NTCHW, pos_NT2, sizes_NT, params,
                          *, tile_m=256, tile_n=512, out_dtype=jnp.bfloat16):
    N, T, C, H, W = patches_NTCHW.shape
    Din = C * H * W
    M = N * T

    wp = params["w_patchify"]          # (Din, dim) f32
    z = params["z"]                    # (nfreqs, 3) f32
    freqs = params["freqs"]            # (nfreqs,)  f32
    we = params["w_emb_proj"]          # (2*nfreqs, dim) f32
    dim = wp.shape[1]
    nfreqs = z.shape[0]

    dim_p = _round_up(dim, 128)
    in_itemsize = jnp.dtype(patches_NTCHW.dtype).itemsize
    out_itemsize = jnp.dtype(out_dtype).itemsize

    # generation-aware VMEM budget (v7x: 64 MiB/TC, v5e/v6e: 128 MiB), with headroom
    vmem_budget = (_vmem_capacity_bytes() * 3) // 4

    # ---- choose tiling: prefer a 1-D grid over rows with all weights resident ----
    tile_m_eff, M_p = _pick_tile_m(M, tile_m)
    while (_vmem_need(tile_m_eff, dim_p, Din, nfreqs, in_itemsize, out_itemsize)
           > vmem_budget and tile_m_eff > 64):
        tile_m_eff, M_p = _pick_tile_m(M, max(64, tile_m_eff // 2))
    one_d = (_vmem_need(tile_m_eff, dim_p, Din, nfreqs, in_itemsize, out_itemsize)
             <= vmem_budget)

    # ---- one-time param staging (tiny) ----
    zs = (z * (freqs[:, None] / 3.0)).T.astype(jnp.float32)   # (3, nfreqs)
    we_sin = we[:nfreqs].astype(jnp.float32)                  # rows [0:nf]   -> sin
    we_cos = we[nfreqs:].astype(jnp.float32)                  # rows [nf:2nf] -> cos
    if dim_p != dim:
        padd = ((0, 0), (0, dim_p - dim))
        wp = jnp.pad(wp, padd)
        we_sin = jnp.pad(we_sin, padd)
        we_cos = jnp.pad(we_cos, padd)
    wp_bf = wp.astype(jnp.bfloat16)

    # ---- input staging: flatten rows; NO dtype conversion (cast happens in-kernel) ----
    patches_MD = patches_NTCHW.reshape(M, Din)
    pos_M3 = jnp.concatenate(
        [pos_NT2.reshape(M, 2).astype(jnp.float32),
         sizes_NT.reshape(M, 1).astype(jnp.float32)], axis=-1)
    if M_p != M:
        # TODO(synk): ragged row tail with no multiple-of-8 divisor -- falls back to
        # padding (one extra pass over patches); not hit for typical shapes.
        patches_MD = jnp.pad(patches_MD, ((0, M_p - M), (0, 0)))
        pos_M3 = jnp.pad(pos_M3, ((0, M_p - M), (0, 0)))

    n_row_tiles = M_p // tile_m_eff

    if one_d:
        # 1-D grid over rows: weights resident (constant block index -> fetched once),
        # sin/cos computed exactly once per row tile.
        tile_n_eff = dim_p
        grid = (n_row_tiles,)
        in_specs = [
            pl.BlockSpec((tile_m_eff, Din), lambda i: (i, 0)),
            pl.BlockSpec((tile_m_eff, 3), lambda i: (i, 0)),
            pl.BlockSpec((Din, dim_p), lambda i: (0, 0)),
            pl.BlockSpec((3, nfreqs), lambda i: (0, 0)),
            pl.BlockSpec((nfreqs, dim_p), lambda i: (0, 0)),
            pl.BlockSpec((nfreqs, dim_p), lambda i: (0, 0)),
        ]
        out_spec = pl.BlockSpec((tile_m_eff, dim_p), lambda i: (i, 0))
        dim_sems = ("parallel",)
    else:
        # Feature axis must be tiled: keep rows as the INNER grid axis so the weight
        # block index is constant across it and the weights stay resident in VMEM.
        tile_n_eff = _pick_tile_n(dim_p, tile_n)
        while (_vmem_need(tile_m_eff, tile_n_eff, Din, nfreqs, in_itemsize, out_itemsize)
               > vmem_budget and tile_n_eff > 128):
            tile_n_eff = _pick_tile_n(dim_p, tile_n_eff - 128)
        grid = (dim_p // tile_n_eff, n_row_tiles)
        in_specs = [
            pl.BlockSpec((tile_m_eff, Din), lambda j, i: (i, 0)),
            pl.BlockSpec((tile_m_eff, 3), lambda j, i: (i, 0)),
            pl.BlockSpec((Din, tile_n_eff), lambda j, i: (0, j)),
            pl.BlockSpec((3, nfreqs), lambda j, i: (0, 0)),
            pl.BlockSpec((nfreqs, tile_n_eff), lambda j, i: (0, j)),
            pl.BlockSpec((nfreqs, tile_n_eff), lambda j, i: (0, j)),
        ]
        out_spec = pl.BlockSpec((tile_m_eff, tile_n_eff), lambda j, i: (i, j))
        dim_sems = ("parallel", "parallel")
        # TODO(synk): extremely large Din on v7x may additionally need a K (Din) grid
        # axis with an f32 VMEM accumulator; not needed for the shapes exercised here.

    vmem_need = _vmem_need(tile_m_eff, tile_n_eff, Din, nfreqs, in_itemsize, out_itemsize)
    vmem_limit = int(min(vmem_budget, max(32 * 2**20, 2 * vmem_need)))

    cost = pl.CostEstimate(
        flops=int(2 * M_p * dim_p * (Din + 2 * nfreqs) + 8 * M_p * nfreqs),
        transcendentals=int(2 * M_p * nfreqs * (dim_p // tile_n_eff)),
        bytes_accessed=int(M_p * Din * in_itemsize + M_p * 3 * 4
                           + Din * dim_p * 2 + (3 + 2 * dim_p) * nfreqs * 4
                           + M_p * dim_p * out_itemsize),
    )

    out = pl.pallas_call(
        _patch_decoder_kernel,
        out_shape=jax.ShapeDtypeStruct((M_p, dim_p), out_dtype),
        grid_spec=pltpu.PrefetchScalarGridSpec(
            num_scalar_prefetch=0,
            grid=grid,
            in_specs=in_specs,
            out_specs=out_spec,
        ),
        compiler_params=pltpu.CompilerParams(
            dimension_semantics=dim_sems,
            vmem_limit_bytes=vmem_limit,
        ),
        cost_estimate=cost,
    )(patches_MD, pos_M3, wp_bf, zs, we_sin, we_cos)

    return out[:M, :dim].reshape(N, T, dim)


def make_params(key, *, patch_size, dim, nfreqs, min_freq=0.1, max_freq=100.0):
    C, H, W = patch_size
    Din = C * H * W
    k1, k2, k3 = jax.random.split(key, 3)

    # FusedLinear(patchify): weight (dim, Din); stored transposed for x @ W
    w_patch = jax.random.normal(k1, (dim, Din), jnp.float32) * (Din ** -0.5)
    # FourierEmbed z: randn(nfreqs, 3), rms-normalized over last dim
    z = jax.random.normal(k2, (nfreqs, 3), jnp.float32)
    z = z / jnp.sqrt(jnp.mean(z ** 2, axis=1, keepdims=True) + 1e-7)
    freqs = min_freq * (max_freq / min_freq) ** jnp.linspace(0.0, 1.0, nfreqs)
    # FusedLinear(emb_proj): weight (dim, 2*nfreqs)
    w_emb = jax.random.normal(k3, (dim, 2 * nfreqs), jnp.float32) * ((2 * nfreqs) ** -0.5)

    return {
        "w_patchify": w_patch.T,        # (Din, dim)
        "z": z,                         # (nfreqs, 3)
        "freqs": freqs,                 # (nfreqs,)
        "w_emb_proj": w_emb.T,          # (2*nfreqs, dim)
    }


def _reference(patches_NTCHW, pos_NT2, sizes_NT, params):
    N, T, C, H, W = patches_NTCHW.shape
    x = patches_NTCHW.reshape(N, T, -1).astype(jnp.float32) @ params["w_patchify"]
    pos3 = jnp.concatenate([pos_NT2, sizes_NT[..., None]], axis=-1).astype(jnp.float32)
    align = jnp.mean(params["z"][None, None] * pos3[..., None, :], axis=-1)  # (N,T,nf)
    theta = params["freqs"] * align
    pe = jnp.concatenate([jnp.sin(theta), jnp.cos(theta)], axis=-1)
    emb = pe @ params["w_emb_proj"]
    return x + emb


if __name__ == "__main__":
    N, T = 2, 8
    C, H, W = 4, 4, 4
    dim = 32
    nfreqs = 8

    key = jax.random.PRNGKey(0)
    kp, kx, kpos, ksz = jax.random.split(key, 4)

    params = make_params(kp, patch_size=[C, H, W], dim=dim, nfreqs=nfreqs)

    patches = jax.random.normal(kx, (N, T, C, H, W), jnp.float32)
    pos = jax.random.uniform(kpos, (N, T, 2), jnp.float32, minval=-1.0, maxval=1.0)
    sizes = jax.random.uniform(ksz, (N, T), jnp.float32, minval=0.0, maxval=1.0)

    out = patch_decoder_forward(patches, pos, sizes, params)
    out = jax.block_until_ready(out)

    ref = _reference(patches, pos, sizes, params)
    assert out.shape == (N, T, dim)
    # bf16 MXU inputs + bf16 output (f32 accumulation) -> relaxed tolerance vs f32 ref
    assert jnp.allclose(out.astype(jnp.float32), ref, atol=5e-2, rtol=5e-2)

    print("KERNEL_OK")
</pallas_src>

<mosaic_0001>
module attributes {stable_mosaic.version = 11 : i64} {
  func.func @_patch_decoder_kernel(%arg0: i32, %arg1: memref<8x64xf32, #tpu.memory_space<vmem>>, %arg2: memref<8x3xf32, #tpu.memory_space<vmem>>, %arg3: memref<64x128xbf16, #tpu.memory_space<vmem>>, %arg4: memref<3x8xf32, #tpu.memory_space<vmem>>, %arg5: memref<8x128xf32, #tpu.memory_space<vmem>>, %arg6: memref<8x128xf32, #tpu.memory_space<vmem>>, %arg7: memref<8x128xbf16, #tpu.memory_space<vmem>>) attributes {dimension_semantics = [#tpu.dimension_semantics<parallel>], iteration_bounds = array<i64: 2>, scalar_prefetch = 0 : i64, scratch_operands = 0 : i64, tpu.core_type = #tpu.core_type<tc>, window_params = [{transform_indices = @transform_0, window_bounds = array<i64: 8, 64>}, {transform_indices = @transform_1, window_bounds = array<i64: 8, 3>}, {pipeline_mode = #tpu.pipeline_mode<synchronous>, transform_indices = @transform_2, window_bounds = array<i64: 64, 128>}, {pipeline_mode = #tpu.pipeline_mode<synchronous>, transform_indices = @transform_3, window_bounds = array<i64: 3, 8>}, {pipeline_mode = #tpu.pipeline_mode<synchronous>, transform_indices = @transform_4, window_bounds = array<i64: 8, 128>}, {pipeline_mode = #tpu.pipeline_mode<synchronous>, transform_indices = @transform_5, window_bounds = array<i64: 8, 128>}, {transform_indices = @transform_6, window_bounds = array<i64: 8, 128>}]} {
    %c0 = arith.constant 0 : index
    %c0_0 = arith.constant 0 : index
    %0 = vector.load %arg1[%c0, %c0_0] : memref<8x64xf32, #tpu.memory_space<vmem>>, vector<8x64xf32>
    %1 = arith.truncf %0 : vector<8x64xf32> to vector<8x64xbf16>
    %c0_1 = arith.constant 0 : index
    %c0_2 = arith.constant 0 : index
    %2 = vector.load %arg3[%c0_1, %c0_2] : memref<64x128xbf16, #tpu.memory_space<vmem>>, vector<64x128xbf16>
    %cst = arith.constant dense<0.000000e+00> : vector<8x128xf32>
    %3 = tpu.matmul %1, %2, %cst {dimension_numbers = #tpu.dot_dimension_numbers<[1], [0], [0], [1], [0, 0, 1, 1], [], []>} : vector<8x64xbf16>, vector<64x128xbf16>, vector<8x128xf32> -> vector<8x128xf32>
    %c0_3 = arith.constant 0 : index
    %c0_4 = arith.constant 0 : index
    %4 = vector.load %arg2[%c0_3, %c0_4] : memref<8x3xf32, #tpu.memory_space<vmem>>, vector<8x3xf32>
    %c0_5 = arith.constant 0 : index
    %c0_6 = arith.constant 0 : index
    %5 = vector.load %arg4[%c0_5, %c0_6] : memref<3x8xf32, #tpu.memory_space<vmem>>, vector<3x8xf32>
    %6 = vector.extract_strided_slice %4 {offsets = [0, 0], sizes = [8, 1], strides = [1, 1]} : vector<8x3xf32> to vector<8x1xf32>
    %7 = vector.extract_strided_slice %5 {offsets = [0, 0], sizes = [1, 8], strides = [1, 1]} : vector<3x8xf32> to vector<1x8xf32>
    %8 = vector.broadcast %6 : vector<8x1xf32> to vector<8x8xf32>
    %9 = vector.broadcast %7 : vector<1x8xf32> to vector<8x8xf32>
    %10 = arith.mulf %8, %9 : vector<8x8xf32>
    %11 = vector.extract_strided_slice %4 {offsets = [0, 1], sizes = [8, 1], strides = [1, 1]} : vector<8x3xf32> to vector<8x1xf32>
    %12 = vector.extract_strided_slice %5 {offsets = [1, 0], sizes = [1, 8], strides = [1, 1]} : vector<3x8xf32> to vector<1x8xf32>
    %13 = vector.broadcast %11 : vector<8x1xf32> to vector<8x8xf32>
    %14 = vector.broadcast %12 : vector<1x8xf32> to vector<8x8xf32>
    %15 = arith.mulf %13, %14 : vector<8x8xf32>
    %16 = arith.addf %10, %15 : vector<8x8xf32>
    %17 = vector.extract_strided_slice %4 {offsets = [0, 2], sizes = [8, 1], strides = [1, 1]} : vector<8x3xf32> to vector<8x1xf32>
    %18 = vector.extract_strided_slice %5 {offsets = [2, 0], sizes = [1, 8], strides = [1, 1]} : vector<3x8xf32> to vector<1x8xf32>
    %19 = vector.broadcast %17 : vector<8x1xf32> to vector<8x8xf32>
    %20 = vector.broadcast %18 : vector<1x8xf32> to vector<8x8xf32>
    %21 = arith.mulf %19, %20 : vector<8x8xf32>
    %22 = arith.addf %16, %21 : vector<8x8xf32>
    %23 = math.sin %22 : vector<8x8xf32>
    %24 = math.cos %22 : vector<8x8xf32>
    %c0_7 = arith.constant 0 : index
    %c0_8 = arith.constant 0 : index
    %25 = vector.load %arg5[%c0_7, %c0_8] : memref<8x128xf32, #tpu.memory_space<vmem>>, vector<8x128xf32>
    %cst_9 = arith.constant dense<0.000000e+00> : vector<8x128xf32>
    %26 = tpu.matmul %23, %25, %cst_9 {dimension_numbers = #tpu.dot_dimension_numbers<[1], [0], [0], [1], [0, 0, 1, 1], [], []>} : vector<8x8xf32>, vector<8x128xf32>, vector<8x128xf32> -> vector<8x128xf32>
    %c0_10 = arith.constant 0 : index
    %c0_11 = arith.constant 0 : index
    %27 = vector.load %arg6[%c0_10, %c0_11] : memref<8x128xf32, #tpu.memory_space<vmem>>, vector<8x128xf32>
    %cst_12 = arith.constant dense<0.000000e+00> : vector<8x128xf32>
    %28 = tpu.matmul %24, %27, %cst_12 {dimension_numbers = #tpu.dot_dimension_numbers<[1], [0], [0], [1], [0, 0, 1, 1], [], []>} : vector<8x8xf32>, vector<8x128xf32>, vector<8x128xf32> -> vector<8x128xf32>
    %29 = arith.addf %26, %28 : vector<8x128xf32>
    %30 = arith.addf %3, %29 : vector<8x128xf32>
    %31 = arith.truncf %30 : vector<8x128xf32> to vector<8x128xbf16>
    %c0_13 = arith.constant 0 : index
    %c0_14 = arith.constant 0 : index
    %32 = vector.load %arg7[%c0_13, %c0_14] : memref<8x128xbf16, #tpu.memory_space<vmem>>, vector<8x128xbf16>
    tpu.vector_store %arg7[%c0_13, %c0_14], %31 {strides = array<i32>} : memref<8x128xbf16, #tpu.memory_space<vmem>>, vector<8x128xbf16>,
    return
  }
  func.func @transform_0(%arg0: i32) -> (i32, i32) {
    %c0_i32 = arith.constant 0 : i32
    %c0_i32_0 = arith.constant 0 : i32
    return %arg0, %c0_i32 : i32, i32
  }
  func.func @transform_1(%arg0: i32) -> (i32, i32) {
    %c0_i32 = arith.constant 0 : i32
    %c0_i32_0 = arith.constant 0 : i32
    return %arg0, %c0_i32 : i32, i32
  }
  func.func @transform_2(%arg0: i32) -> (i32, i32) {
    %c0_i32 = arith.constant 0 : i32
    %c0_i32_0 = arith.constant 0 : i32
    %c0_i32_1 = arith.constant 0 : i32
    return %c0_i32, %c0_i32_0 : i32, i32
  }
  func.func @transform_3(%arg0: i32) -> (i32, i32) {
    %c0_i32 = arith.constant 0 : i32
    %c0_i32_0 = arith.constant 0 : i32
    %c0_i32_1 = arith.constant 0 : i32
    return %c0_i32, %c0_i32_0 : i32, i32
  }
  func.func @transform_4(%arg0: i32) -> (i32, i32) {
    %c0_i32 = arith.constant 0 : i32
    %c0_i32_0 = arith.constant 0 : i32
    %c0_i32_1 = arith.constant 0 : i32
    return %c0_i32, %c0_i32_0 : i32, i32
  }
  func.func @transform_5(%arg0: i32) -> (i32, i32) {
    %c0_i32 = arith.constant 0 : i32
    %c0_i32_0 = arith.constant 0 : i32
    %c0_i32_1 = arith.constant 0 : i32
    return %c0_i32, %c0_i32_0 : i32, i32
  }
  func.func @transform_6(%arg0: i32) -> (i32, i32) {
    %c0_i32 = arith.constant 0 : i32
    %c0_i32_0 = arith.constant 0 : i32
    return %arg0, %c0_i32 : i32, i32
  }
}

</mosaic_0001>

<bundles_post_ra>
// kernel: tpu_custom_call.1
= control target key start
LH: loop header
LB: loop body
LE: loop exit
PB: predicated region body
PF: predicated region fallthrough
CT: control target
= control target key end

     0   :  { %11 = vsyncpa [#allocation3], 0  ;;  %s1416_s0 = inlined_call_operand.vmem [shape: f32[16,64], index: 0, kind: input, shape index: {}]   ;;  %s1417_s1 = inlined_call_operand.vmem [shape: f32[16,3], index: 1, kind: input, shape index: {}]   ;;  %s1418_s2 = inlined_call_operand.hbm [shape: bf16[64,128], index: 2, kind: input, shape index: {}]   ;;  %s1419_s3 = inlined_call_operand.hbm [shape: f32[3,8], index: 3, kind: input, shape index: {}]   ;;  %s1420_s4 = inlined_call_operand.vmem [shape: f32[8,128], index: 4, kind: input, shape index: {}]   ;;  %s1421_s5 = inlined_call_operand.vmem [shape: f32[8,128], index: 5, kind: input, shape index: {}]   ;;  %s1422_s6 = inlined_call_operand.hbm [shape: bf16[16,128], index: 6, kind: output, shape index: {}]  }
   0x1   :  { %12 = vsyncpa [#allocation6], 0 }
   0x2   :  { %13 = vsyncpa [#allocation4], 0 }
   0x3   :  { %15 = vsyncpa [#allocation4 + $0x1], 0  ;;  %s1199_s21 = smov 0   ;;  %s1201_s22 = smov 0  }
   0x4   :  { %s1203_s23 = smov 0   ;;  %s1205_s24 = smov 0  }
   0x5 LB: > { %s1220_s25 = sadd.s32 4294967295, %s1146_s24   ;;  %s868_s26 = sadd.s32 4294967294, %s1146_s24   ;;  %s1146_s24 = sphi %s1205_s24, %s1440_s24   ;;  %s1142_s23 = sphi %s1203_s23, %s1439_s23   ;;  %s1138_s22 = sphi %s1201_s22, %s1438_s22   ;;  %s1134_s21 = sphi %s1199_s21, %s1437_s21  }
   0x6   : > { %s1224_s27 = sadd.s32 1, %s1146_s24   ;;  %s164_s28 = sadd.s32 1, %s1142_s23 }
   0x7   : > { %s161_s29 = ssub.s32 %s1146_s24, %s1224_s27  ;;  %p174_p0 = scmp.ne.s32.totalorder %s1142_s23, %s1138_s22 }
   0x8   : > { %p162_p1 = scmp.eq.s32.totalorder %s161_s29, 0  ;;  %p175_p2 = scmp.eq.s32.totalorder %s1220_s25, 1 }
   0x9   : > { %p180_p3 = scmp.ne.s32.totalorder %s1138_s22, %s1134_s21  ;;  %p181_p4 = scmp.eq.s32.totalorder %s868_s26, 1 }
   0xa   : > { %s1235_s30 = scalar_select %p162_p1, %s1142_s23, %s164_s28  }
   0xb   : > { %p1237_p5 = por %p175_p2, %p174_p0  ;;  %p1241_p6 = por %p181_p4, %p180_p3 }
   0xc   : > { %p869_p7 = scmp.ge.s32.totalorder %s1146_s24, 1  ;;  %p188_p8 = scmp.lt.s32.totalorder %s1146_s24, 3 }
   0xd   : > { %s1426_s7 = scalar_select %p1237_p5, 1, 0 }
   0xe   : > { %s1427_s8 = scalar_select %p1241_p6, 1, 0 }
   0xf   : > { %p1423_p9 = scmp.eq.s32.totalorder %s1220_s25, 0  ;;  %p1248_p10 = pnand %p869_p7, %p188_p8 }
  0x10   : > { %s1148_s10 = smov [#allocation2]   ;;  %s1149_s13 = smov [#allocation5]  }
  0x11   : > { %s1428_s9 = scalar_select %p1248_p10, 1, 0 }
  0x12   : > { %s200_s11 = sshll.u32 %s1148_s10, 4  ;;  %p945_p11 = pneg %p1248_p10  ;;  %s201_s11 = int_to_ptr.vmem [resolvable:$true] %s200_s11 }
  0x13   : > { %s214_s14 = sshll.u32 %s1149_s13, 4  ;;  %s1020_s17 = scalar_lea.hbm %s1418_s2, 512  ;;  %s1260_s14 = int_to_ptr.vmem [resolvable:$true] %s214_s14 }
  0x14   : > { %p1256_p12 = pnand %p1423_p9, %p945_p11  ;;  %p1021_p13 = scmp.ne.s32.totalorder %s1418_s2, %s1020_s17 }
  0x15   : > { %p1027_p3 = scmp.lt.u32.totalorder %s1020_s17, %s1418_s2 }
  0x16   : > { %p1022_p0 = pneg %p1256_p12 }
  0x18   : > { %p1023_p1 = pnand %p1022_p0, %p1021_p13 }
  0x1a   : > { %p1024_p2 = pneg %p1023_p1 }
  0x1c   : > { %p1029_p4 = pnand %p1027_p3, %p1024_p2 }
  0x1e   : > { %1032 = shalt.err (!%p1029_p4)
}
  0x1f   : > { %s1033_s28 = scalar_lea.vmem %s201_s11, 512  ;;  %p1041_p9 = scmp.lt.s32.totalorder %s201_s11, %s201_s11 }
  0x20   : > { %p1034_p7 = scmp.ne.s32.totalorder %s201_s11, %s1033_s28  ;;  %p1042_p6 = scmp.lt.s32.totalorder %s1033_s28, %s1033_s28 }
  0x22   : > { %p1036_p8 = pnand %p1034_p7, %p1022_p0  ;;  %p1043_p5 = por %p1042_p6, %p1041_p9 }
  0x24   : > { %p1037_p11 = pneg %p1036_p8 }
  0x26   : > { %p1044_p10 = pnand %p1043_p5, %p1037_p11 }
  0x28   : > { %1047 = shalt.err (!%p1044_p10)
}
  0x29   : > { %s1150_s29 = smov 64   ;;  %s1151_s10 = smov 4  }
  0x2a   : > { %948 = dma.hbm_to_vmem [thread:$0]  (!%p1256_p12), %s1418_s2, 512, %s201_s11, [#allocation3], %s1150_s29, %s1150_s29, %s1151_s10  }
  0x2b   : > { %s1048_s18 = scalar_lea.hbm %s1419_s3, 64 }
  0x2c   : > { %p1049_p13 = scmp.ne.s32.totalorder %s1419_s3, %s1048_s18  ;;  %p1055_p9 = scmp.lt.u32.totalorder %s1048_s18, %s1419_s3 }
  0x2e   : > { %p1051_p5 = pnand %p1049_p13, %p1022_p0 }
  0x30   : > { %p1052_p6 = pneg %p1051_p5 }
  0x32   : > { %p1057_p10 = pnand %p1055_p9, %p1052_p6 }
  0x34   : > { %1060 = shalt.err (!%p1057_p10)
}
  0x35   : > { %s1061_s11 = scalar_lea.vmem %s1260_s14, 64  ;;  %p1069_p4 = scmp.lt.s32.totalorder %s1260_s14, %s1260_s14 }
  0x36   : > { %p1062_p1 = scmp.ne.s32.totalorder %s1260_s14, %s1061_s11  ;;  %p1070_p7 = scmp.lt.s32.totalorder %s1061_s11, %s1061_s11 }
  0x38   : > { %p1064_p2 = pnand %p1062_p1, %p1022_p0  ;;  %p1071_p8 = por %p1070_p7, %p1069_p4 }
  0x3a   : > { %p1065_p3 = pneg %p1064_p2 }
  0x3c   : > { %p1072_p11 = pnand %p1071_p8, %p1065_p3 }
  0x3e   : > { %1075 = shalt.err (!%p1072_p11)
}
  0x3f   : > { %951 = dma.hbm_to_vmem [thread:$0]  (!%p1256_p12), %s1419_s3, 64, %s1260_s14, [#allocation6]  }
  0x40   : > { %p1430_p13 = scmp.ne.s32.totalorder %s1428_s9, 0 }
  0x41   : > { %p1431_p5 = scmp.eq.s32.totalorder (!%p1430_p13), %s1220_s25, 0 }
  0x42   : > { %247 = sbr.rel (%p1430_p13) target bundleno = 541 (0x21d), region = 44 }
  0x49   : > { %1121 = dma.done.wait (%p1431_p5), [#allocation3], 512   ;;  %p1432_p0 = pmov %p1431_p5 }
  0x4b   : > { %1123 = vsyncadd (%p1432_p0), [#allocation3], 4294966784  ;;  %p1433_p6 = pmov %p1432_p0 }
  0x4c   : > { %p1434_p9 = pmov %p1432_p0 }
  0x4d   : > { %1125 = dma.done.wait (%p1433_p6), [#allocation6], 64  }
  0x4e   : > { %1127 = vsyncadd (%p1434_p9), [#allocation6], 4294967232  ;;  %p284_p10 = scmp.lt.s32.totalorder %s1220_s25, 1  ;;  %v1152_v0 = vmov 0   ;;  %v1153_v1 = vmov 2   ;;  %v1154_v3 = vmov 1   ;;  %v310_v12 = vlaneseq }
  0x4f   : > { %1008 = vset.pattern.permute.xlu0 %v1152_v0  ;;  %1010 = vset.pattern.permute.xlu1 %v1153_v1  ;;  %v1012_v4 = vld [vmem:[#allocation2] sm:$0xff]   ;;  %v1155_v6 = vmov 0.0   ;;  %v1013_v7 = vld [vmem:[#allocation2 + $0x8] sm:$0xff]   ;;  %vm1156_vm0 = vmmov 0   ;;  %v1014_v8 = vld [vmem:[#allocation2 + $0x10] sm:$0xff]   ;;  %vm715_vm1 = vcmask 523264  }
  0x50   : > { %s1321_s9 = scalar_select %p284_p10, %s1220_s25, 1  ;;  %v543_v5 = vld [vmem:[%s1421_s5] sm:$0xff]  ;;  %917 = vmatprep.subr.bf16.mxu1 %v1155_v6  ;;  %907 = vmatprep.subr.mxu0 %v1155_v6  ;;  %v1015_v10 = vld [vmem:[#allocation2 + $0x18] sm:$0xff]   ;;  %v311_v13 = vshrl.u32 %v310_v12, 7  ;;  %v1157_v39 = vmov 683565275  }
  0x51   : > { %918 = vmatpush3.bf16.msra.mxu1 %v1012_v4  ;;  %908 = vmatpush3.msra.mxu0 %v543_v5  ;;  %v304_v17 = vld [vmem:[#allocation5] sm:$0x7]  ;;  %v1158_v41 = vmov 2475754826   ;;  %v1159_v44 = vmov 2131351028  }
  0x52   : > { %s877_s12 = sshll.u32 %s1321_s9, 3  ;;  %919 = vmatprep.subr.bf16.mxu1 %v1155_v6  ;;  %909 = vmatprep.mubr.msk.f32.mxu0 %vm1156_vm0, %v1155_v6  ;;  %v312_v14 = vsub.s32 0, %v311_v13  ;;  %v321_v15 = vsub.s32 1, %v311_v13  ;;  %v331_v16 = vsub.s32 2, %v311_v13  ;;  %v1160_v47 = vmov 2102212464  }
  0x53   : > { %s291_s15 = scalar_lea.vmem %s1417_s1, %s877_s12  ;;  %912 = vmatprep.subr.mxu0 %v1155_v6  ;;  %925 = vmatprep.mubr.msk.bf16.mxu1 %vm1156_vm0, %v1155_v6  ;;  %s287_s20 = scalar_lea.vmem %s1416_s0, %s877_s12  ;;  %v1161_v50 = vmov 920167782   ;;  %v1162_v53 = vmov 1326507024   ;;  %vm544_vm14 = vcmask 64512  }
  0x54   : > { %v303_v2 = vld [vmem:[%s291_s15] sm:$0xff]  ;;  %v313_v19 = vrot.slane %v304_v17, %v312_v14  ;;  %v322_v20 = vrot.slane %v304_v17, %v321_v15  ;;  %v332_v21 = vrot.slane %v304_v17, %v331_v16  ;;  %s281_s11 = sand.u32 1, %s1138_s22   ;;  %s895_s10 = sshll.u32 %s1220_s25, 6 }
  0x55   : > { %307 = vperm.xlu0 %1008, %v303_v2   ;;  %326 = vperm.xlu1 %1010, %v303_v2   ;;  %v293_v9 = vld [vmem:[%s287_s20] sm:$0xff]  ;;  %s876_s29 = sshll.u32 %s281_s11, 2  ;;  %s1374_s15 = scalar_lea.hbm %s1422_s6, %s895_s10 }
  0x56   : > { %920 = vmatpush3.bf16.msra.mxu1 %v1013_v7  ;;  %v294_v11 = vpack.c.bf16 %v293_v9, %v293_v9  ;;  %s283_s9 = scalar_lea.vmem [#allocation7], %s876_s29  ;;  %s762_s16 = scalar_lea.sflag [#allocation4], %s281_s11 }
  0x57   : > { %921 = vmatprep.subr.bf16.mxu1 %v1155_v6  ;;  %s775_s12 = sshll.u32 %s283_s9, 4  ;;  %p1435_p1 = scmp.ne.s32.totalorder %s1426_s7, 0  ;;  %s1376_s12 = int_to_ptr.vmem [resolvable:$true] %s775_s12 }
  0x58   : > { %s1076_s17 = scalar_lea.vmem %s1376_s12, 64  ;;  %s1163_s25 = smov [#allocation7]  }
  0x59   : > { %1009 = vset.pattern.permute.xlu0 %v1154_v3  ;;  %p1077_p12 = scmp.ne.s32.totalorder %s1376_s12, %s1076_s17  ;;  %s1080_s18 = sshll.u32 %s1163_s25, 4  ;;  %s1081_s18 = int_to_ptr.vmem [resolvable:$false] %s1080_s18 }
  0x5a   : > { %316 = vperm.xlu0 %1009, %v303_v2   ;;  %922 = vmatpush3.bf16.msra.mxu1 %v1014_v8  ;;  %s1082_s19 = scalar_lea.vmem %s1081_s18, 128  ;;  %p1083_p4 = scmp.lt.s32.totalorder %s1376_s12, %s1081_s18 }
  0x5b   : > { %923 = vmatprep.subr.bf16.mxu1 %v1155_v6  ;;  %p1078_p2 = pnand %p1077_p12, %p1435_p1  ;;  %p1084_p7 = scmp.lt.s32.totalorder %s1082_s19, %s1076_s17 }
  0x5d   : > { %p1079_p3 = pneg %p1078_p2  ;;  %p1085_p8 = por %p1084_p7, %p1083_p4 }
  0x5e   : > { %1011 = vset.pattern.permute.xlu0 %v1153_v1  ;;  %924 = vmatpush3.bf16.msra.mxu1 %v1015_v10 }
  0x5f   : > { %p1086_p11 = pnand %p1085_p8, %p1079_p3 }
  0x61   : > { %926 = vmatmul.mubr.msk.bf16.vlgmr.msra.gmra.mrb[0].mxu1 %vm715_vm1, %v294_v11 }
  0xd4   : > { %v308_v18 = vpop.permute.xlu0 %307  ;;  %v327_v22 = vpop.permute.xlu1 %326 }
  0xd5   : > { %v314_v24 = vmul.f32 %v313_v19, %v308_v18  ;;  %v333_v26 = vmul.f32 %v332_v21, %v327_v22 }
  0xd9   : > { %v317_v23 = vpop.permute.xlu0 %316 }
  0xda   : > { %v323_v25 = vmul.f32 %v322_v20, %v317_v23 }
  0xdc   : > { %v324_v27 = vadd.f32 %v323_v25, %v314_v24 }
  0xde   : > { %v1343_v28 = vadd.f32 %v333_v26, %v324_v27 }
  0xe0   : > { %v338_v29 = vand.u32 2139095040, %v1343_v28  ;;  %v335_v33 = vand.u32 2147483647, %v1343_v28  ;;  %vm337_vm9 = vcmp.lt.s32.totalorder %v1343_v28, 0  ;;  %vm427_vm15 = vweird.f32 %v1343_v28 }
  0xe2   : > { %v339_v30 = vshrl.u32 %v338_v29, 23  ;;  %v342_v36 = vand.u32 8388607, %v335_v33  ;;  %vm336_vm10 = vcmp.le.f32.partialorder %v335_v33, 0.7853982 }
  0xe4   : > { %v879_v31 = vadd.s32 4294967169, %v339_v30  ;;  %v343_v55 = vor.u32 8388608, %v342_v36 }
  0xe6   : > { %v345_v32 = vadd.s32 1, %v879_v31  ;;  %v383_v5 = vshll.u32 %v343_v55, 8 }
  0xe8   : > { %vm346_vm2 = vcmp.gt.s32.totalorder %v345_v32, 0 }
  0xe9   : > { %v347_v34 = vsel %vm346_vm2, %v345_v32, 0 }
  0xea   : > { %v349_v35 = vand.u32 31, %v347_v34  ;;  %v348_v38 = vshrl.u32 %v347_v34, 5 }
  0xec   : > { %v350_v37 = vsub.s32 32, %v349_v35  ;;  %v352_v40 = vshll.u32 %v1157_v39, %v349_v35  ;;  %v355_v42 = vshll.u32 %v1158_v41, %v349_v35  ;;  %v358_v46 = vshll.u32 %v1159_v44, %v349_v35 }
  0xed   : > { %v361_v49 = vshll.u32 %v1160_v47, %v349_v35  ;;  %v364_v52 = vshll.u32 %v1161_v50, %v349_v35  ;;  %vm367_vm3 = vcmp.lt.s32.totalorder %v348_v38, 1  ;;  %vm370_vm4 = vcmp.lt.s32.totalorder %v348_v38, 4 }
  0xee   : > { %v353_v43 = vshrl.u32 %v1158_v41, %v350_v37  ;;  %v356_v45 = vshrl.u32 %v1159_v44, %v350_v37  ;;  %v359_v48 = vshrl.u32 %v1160_v47, %v350_v37  ;;  %v362_v51 = vshrl.u32 %v1161_v50, %v350_v37 }
  0xef   : > { %v365_v54 = vshrl.u32 %v1162_v53, %v350_v37  ;;  %v351_v0 = vshrl.u32 %v1157_v39, %v350_v37  ;;  %vm369_vm5 = vcmp.lt.s32.totalorder %v348_v38, 3  ;;  %vm368_vm6 = vcmp.lt.s32.totalorder %v348_v38, 2 }
  0xf0   : > { %v354_v56 = vor.u32 %v353_v43, %v352_v40  ;;  %v357_v57 = vor.u32 %v356_v45, %v355_v42  ;;  %v360_v58 = vor.u32 %v359_v48, %v358_v46  ;;  %v363_v59 = vor.u32 %v362_v51, %v361_v49 }
  0xf1   : > { %v366_v60 = vor.u32 %v365_v54, %v364_v52 }
  0xf2   : > { %v372_v61 = vsel %vm370_vm4, %v360_v58, 2102212464  ;;  %v375_v62 = vsel %vm367_vm3, %v354_v56, %v357_v57  ;;  %v379_v63 = vsel %vm367_vm3, %v357_v57, %v360_v58  ;;  %v376_v1 = vsel %vm370_vm4, %v363_v59, 920167782 }
  0xf3   : > { %v380_v2 = vsel %vm370_vm4, %v366_v60, 1326507024  ;;  %v377_v3 = vsel %vm369_vm5, %v360_v58, %v376_v1  ;;  %v371_v7 = vsel %vm367_vm3, %v351_v0, %v354_v56  ;;  %v373_v8 = vsel %vm369_vm5, %v357_v57, %v372_v61  ;;  %v542_v58 = vld [vmem:[%s1420_s4] sm:$0xff] }
  0xf4   : > { %v381_v4 = vsel %vm369_vm5, %v363_v59, %v380_v2  ;;  %v378_v9 = vsel %vm368_vm6, %v375_v62, %v377_v3  ;;  %v374_v15 = vsel %vm368_vm6, %v371_v7, %v373_v8 }
  0xf5   : > { %v382_v10 = vsel %vm368_vm6, %v379_v63, %v381_v4  ;;  %v1352_v13 = vmul.u32.u64.low %v383_v5, %v378_v9  ;;  %v1353_v14 = vmul.u32.u64.high %v383_v5, %v378_v9, %v1352_v13  ;;  %v390_v17 = vmul.u32 %v383_v5, %v374_v15 }
  0xf6   : > { %v1349_v11 = vmul.u32.u64.low %v383_v5, %v382_v10  ;;  %v1350_v12 = vmul.u32.u64.high %v383_v5, %v382_v10, %v1349_v11 }
  0xf7   : > { %v393_v16 = vadd.s32 1, %v1353_v14 }
  0xf8   : > { %vm392_vm7 = vc.u32 %v1350_v12, %v1352_v13  ;;  %v391_v30 = vadd.s32 %v1352_v13, %v1350_v12 }
  0xf9   : > { %v394_v18 = vsel %vm392_vm7, %v393_v16, %v1353_v14 }
  0xfa   : > { %v395_v19 = vadd.s32 %v394_v18, %v390_v17 }
  0xfc   : > { %v396_v20 = vadd.s32 536870912, %v395_v19 }
  0xfe   : > { %v397_v21 = vshrl.u32 %v396_v20, 30 }
 0x100   : > { %v398_v22 = vshll.u32 %v397_v21, 30  ;;  %v421_v45 = vsub.s32 4, %v397_v21 }
 0x102   : > { %v399_v23 = vsub.s32 %v395_v19, %v398_v22  ;;  %v422_v47 = vsel %vm337_vm9, %v421_v45, %v397_v21 }
 0x103   : > { %v424_v48 = vsel %vm336_vm10, 0, %v422_v47 }
 0x104   : > { %v401_v24 = vsub.s32 0, %v399_v23  ;;  %v532_v49 = vand.u32 3, %v424_v48  ;;  %v428_v50 = vadd.s32 3, %v424_v48 }
 0x106   : > { %v880_v25 = vmin.u32 %v401_v24, %v399_v23  ;;  %vm537_vm11 = vcmp.eq.s32.totalorder %v532_v49, 2  ;;  %v429_v55 = vand.u32 3, %v428_v50  ;;  %vm534_vm12 = vcmp.eq.s32.totalorder %v532_v49, 0 }
 0x107   : > { %vm533_vm13 = vcmp.lt.s32.totalorder %v532_v49, 2 }
 0x108   : > { %v403_v26 = vclz %v880_v25  ;;  %vm431_vm1 = vcmp.eq.s32.totalorder %v429_v55, 0  ;;  %vm434_vm2 = vcmp.eq.s32.totalorder %v429_v55, 2  ;;  %vm430_vm3 = vcmp.lt.s32.totalorder %v429_v55, 2 }
 0x10a   : > { %v881_v27 = vadd.s32 4294967294, %v403_v26 }
 0x10c   : > { %vm882_vm8 = vcmp.lt.s32.totalorder %v881_v27, 0 }
 0x10d   : > { %v406_v29 = vsel %vm882_vm8, 0, %v881_v27 }
 0x10e   : > { %v407_v31 = vsub.s32 32, %v406_v29  ;;  %v411_v32 = vsub.s32 4294967266, %v406_v29  ;;  %v408_v34 = vshll.u32 %v399_v23, %v406_v29 }
 0x110   : > { %v409_v35 = vshrl.u32 %v391_v30, %v407_v31  ;;  %v412_v36 = vadd.s32 127, %v411_v32 }
 0x112   : > { %v410_v37 = vor.u32 %v409_v35, %v408_v34  ;;  %v413_v38 = vshll.u32 %v412_v36, 23 }
 0x114   : > { %v414_v39 = vor.u32 4788187, %v413_v38  ;;  %v417_v41 = vcvt.s32.f32 %v410_v37 }
 0x116   : > { %v415_v40 = vand.u32 2147483647, %v414_v39 }
 0x118   : > { %v418_v42 = vmul.f32 %v417_v41, %v415_v40 }
 0x11a   : > { %v419_v43 = vxor.u32 2147483648, %v418_v42 }
 0x11c   : > { %v420_v44 = vsel %vm337_vm9, %v419_v43, %v418_v42 }
 0x11d   : > { %v423_v46 = vsel %vm336_vm10, %v1343_v28, %v420_v44 }
 0x11e   : > { %1016 = vcosq.f32 %v423_v46 }
 0x11f   : > { %1018 = vsinq.f32 %v423_v46 }
 0x128   : > { %v1017_v51 = vpop.eup %1016 }
 0x129   : > { %v1019_v52 = vpop.eup %1018  ;;  %v435_v53 = vxor.u32 2147483648, %v1017_v51 }
 0x12a   : > { %v432_v54 = vxor.u32 2147483648, %v1019_v52 }
 0x12b   : > { %v539_v56 = vsel %vm537_vm11, %v435_v53, %v1019_v52  ;;  %v436_v61 = vsel %vm434_vm2, %v435_v53, %v1019_v52 }
 0x12c   : > { %v536_v57 = vsel %vm534_vm12, %v1017_v51, %v432_v54  ;;  %v433_v60 = vsel %vm431_vm1, %v1017_v51, %v432_v54 }
 0x12d   : > { %v540_v33 = vsel %vm533_vm13, %v536_v57, %v539_v56  ;;  %v437_v62 = vsel %vm430_vm3, %v433_v60, %v436_v61 }
 0x12e   : > { %v541_v59 = vsel %vm427_vm15, nan, %v540_v33  ;;  %v438_v28 = vsel %vm427_vm15, nan, %v437_v62 }
 0x12f   : > { %910 = vmatmul.mubr.msk.f32.vlgmr.msra.gmra.mrb[0].mxu0 %vm544_vm14, %v541_v59 }
 0x130   : > { %913 = vmatpush3.msra.mxu0 %v542_v58  ;;  %914 = vmatprep.mubr.msk.f32.mxu0 %vm1156_vm0, %v1155_v6 }
 0x134   : > { %v753_v63 = vpop.f32.mrb[0].mxu1 }
 0x135   : > { %v927_v0 = vpop.f32.mrb[1].mxu1 }
 0x136   : > { %v756_v1 = vpop.f32.mrb[2].mxu1 }
 0x137   : > { %915 = vmatmul.mubr.msk.f32.vlgmr.msra.gmra.mrb[0].mxu0 %vm544_vm14, %v438_v28  ;;  %v928_v2 = vpop.f32.mrb[3].mxu1 }
 0x20a   : > { %v687_v3 = vpop.f32.mrb[0].mxu0 }
 0x20b   : > { %v754_v4 = vadd.f32 %v753_v63, %v687_v3  ;;  %v916_v5 = vpop.f32.mrb[1].mxu0 }
 0x20d   : > { %v759_v7 = vpack.c.bf16 %v754_v4, %v754_v4 }
 0x20f   : > { %760 = vst [vmem:[%s283_s9] sm:$0xf] %v759_v7 }
 0x210   : > { %1089 = shalt.err (!%p1086_p11)
}
 0x211   : > { %s1090_s20 = scalar_lea.hbm %s1374_s15, 64  ;;  %s1094_s11 = scalar_lea.hbm %s1422_s6, 128 }
 0x212   : > { %p1091_p13 = scmp.ne.s32.totalorder %s1374_s15, %s1090_s20  ;;  %p1095_p6 = scmp.lt.u32.totalorder %s1374_s15, %s1422_s6 }
 0x213   : > { %p1096_p9 = scmp.lt.u32.totalorder %s1094_s11, %s1090_s20  ;;  %p1098_p12 = scmp.lt.u32.totalorder %s1090_s20, %s1374_s15 }
 0x214   : > { %p1092_p5 = pnand %p1091_p13, %p1435_p1 }
 0x215   : > { %p1097_p10 = por %p1096_p9, %p1095_p6 }
 0x216   : > { %p1093_p0 = pneg %p1092_p5 }
 0x217   : > { %p1099_p2 = por %p1098_p12, %p1097_p10 }
 0x219   : > { %p1100_p3 = pnand %p1099_p2, %p1093_p0 }
 0x21b   : > { %1103 = shalt.err (!%p1100_p3)
}
 0x21c   : > { %943 = dma.vmem_to_hbm [thread:$0]  (%p1435_p1), %s1376_s12, 64, %s1374_s15, %s762_s16  }
 0x21d PF: > { %p960_p4 = scmp.ge.s32.totalorder %s1146_s24, 2  ;;  %s787_s9 = sand.u32 1, %s1134_s21  }
 0x21e   : > { %p1436_p7 = scmp.ne.s32.totalorder %s1427_s8, 0  ;;  %s788_s14 = scalar_lea.sflag [#allocation4], %s787_s9 }
 0x220   : > { %p953_p8 = pnand %p960_p4, %p1436_p7 }
 0x222   : > { %1129 = dma.done.wait (!%p953_p8), %s788_s14, 64  }
 0x223   : > { %1131 = vsyncadd (!%p953_p8), %s788_s14, 4294967232  ;;  %p18_p11 = scmp.ge.s32.totalorder %s1224_s27, 4   ;;  %s1437_s21 = smov %s1138_s22 }
 0x224   : > { %s1438_s22 = smov %s1142_s23  ;;  %s1439_s23 = smov %s1235_s30 }
 0x225   : > { %s1440_s24 = smov %s1224_s27  ;;  %20 = sbr.rel (!%p18_p11) target bundleno = 5 (0x5), region = 91 }
 0x22c   :  { %793 = vsyncpa [#allocation3], 1 }
 0x22d   :  { %795 = vsyncpa [#allocation3 + $0x1], 1 }
 0x22e   :  { %796 = vsyncpa [#allocation6], 1 }
 0x22f   :  { %797 = vsyncpa [#allocation4], 1 }
 0x230   :  { %799 = vsyncpa [#allocation4 + $0x1], 1 }

</bundles_post_ra>
